<compile_context>
chip_gen: v5e
topology: v5e:2x2
jax: 0.10.0
libtpu: 0.0.40
codegen_flags: <defaults>
</compile_context>

<pallas_src>
import functools

import jax
import jax.numpy as jnp
from jax.experimental import pallas as pl
from jax.experimental.pallas import tpu as pltpu


# ---------------- Pallas kernels ----------------

def _minmax_qparams_kernel(x_ref, delta_ref, zp_ref, min_sc, max_sc, *, n_levels):
    """Tiled full-tensor min/max reduction + qparam computation ('max' method,
    asymmetric, tensor-wise).  Running min/max live in (1,1) VMEM scratch;
    delta / zero_point are written on the last grid step."""
    i = pl.program_id(0)

    x = x_ref[...].astype(jnp.float32)

    @pl.when(i == 0)
    def _():
        min_sc[...] = jnp.full_like(min_sc, jnp.inf)
        max_sc[...] = jnp.full_like(max_sc, -jnp.inf)

    min_sc[...] = jnp.minimum(min_sc[...], jnp.min(x, keepdims=True))
    max_sc[...] = jnp.maximum(max_sc[...], jnp.max(x, keepdims=True))

    @pl.when(i == pl.num_programs(0) - 1)
    def _():
        x_min = min_sc[...]
        x_max = max_sc[...]
        # x_min = min(x.min(), 0)
        x_min_c = jnp.minimum(x_min, 0.0)
        # delta = (x.max() - x.min()) / (n_levels - 1); floor at 1e-8
        delta = (x_max - x_min) / float(n_levels - 1)
        delta = jnp.maximum(delta, jnp.float32(1e-8))
        # zero_point = round(-x_min / delta)
        zp = jnp.round(-x_min_c / delta)
        delta_ref[...] = delta
        zp_ref[...] = zp


def _quant_dequant_kernel(delta_ref, zp_ref, x_ref, o_ref, *, n_levels):
    """Elementwise fake-quant hot path:
         x_int     = round(x / delta) + zero_point     (round_ste forward value)
         x_quant   = clamp(x_int, 0, n_levels - 1)
         x_dequant = (x_quant - zero_point) * delta
    """
    delta = delta_ref[0, 0]
    zp = zp_ref[0, 0]
    x = x_ref[...].astype(jnp.float32)
    # Keep the true division for bit-exact rounding vs. the PyTorch reference.
    x_int = jnp.round(x / delta) + zp
    x_quant = jnp.clip(x_int, 0.0, float(n_levels - 1))
    o_ref[...] = ((x_quant - zp) * delta).astype(o_ref.dtype)


# ---------------- wrapper ----------------

_LANES = 512            # lane-dense last dim (multiple of 128)
_MAX_BLOCK_ROWS = 1024  # 1024 x 512 f32 block = 2 MiB -> 8 MiB double-buffered in+out
_VMEM_LIMIT = 32 * 1024 * 1024


def _round_up(a, b):
    return ((a + b - 1) // b) * b


def uniform_affine_quantizer_forward(x, n_bits=8):
    """Forward pass of UniformAffineQuantizer (default config) on NCHW input."""
    n_levels = 2 ** n_bits
    orig_shape = x.shape
    orig_dtype = x.dtype

    flat = x.reshape(-1)                       # keep native dtype in HBM
    total = flat.shape[0]

    # Sublane granularity for the packed dtype (8 f32 / 16 bf16 / 32 int8 rows).
    itemsize = jnp.dtype(orig_dtype).itemsize
    sub = 8 * max(1, 4 // itemsize)

    # Pick the 2D tiling: (m, _LANES) with block (tm, _LANES), tm | m, tm % sub == 0.
    m0 = -(-total // _LANES)                   # cdiv
    tm = min(_MAX_BLOCK_ROWS, _round_up(m0, sub))
    m = _round_up(m0, tm)
    pad = m * _LANES - total
    if pad:
        # Edge-pad so the min/max reduction is unaffected; tail is sliced off
        # after the kernel.  (pad == 0 for nicely divisible activations.)
        flat = jnp.pad(flat, (0, pad), mode="edge")
    x2d = flat.reshape(m, _LANES)
    grid = (m // tm,)

    # --- pass 1: tiled min/max reduction -> delta, zero_point (f32 (1,1)) ---
    delta2d, zp2d = pl.pallas_call(
        functools.partial(_minmax_qparams_kernel, n_levels=n_levels),
        out_shape=(jax.ShapeDtypeStruct((1, 1), jnp.float32),
                   jax.ShapeDtypeStruct((1, 1), jnp.float32)),
        grid=grid,
        in_specs=[pl.BlockSpec((tm, _LANES), lambda i: (i, 0))],
        out_specs=(pl.BlockSpec((1, 1), lambda i: (0, 0)),
                   pl.BlockSpec((1, 1), lambda i: (0, 0))),
        scratch_shapes=[pltpu.VMEM((1, 1), jnp.float32),
                        pltpu.VMEM((1, 1), jnp.float32)],
        compiler_params=pltpu.CompilerParams(
            dimension_semantics=("arbitrary",),
            vmem_limit_bytes=_VMEM_LIMIT),
    )(x2d)

    # --- pass 2: elementwise quant/dequant, output in the original dtype ---
    out2d = pl.pallas_call(
        functools.partial(_quant_dequant_kernel, n_levels=n_levels),
        out_shape=jax.ShapeDtypeStruct((m, _LANES), orig_dtype),
        grid=grid,
        in_specs=[
            pl.BlockSpec((1, 1), lambda i: (0, 0), memory_space=pltpu.SMEM),
            pl.BlockSpec((1, 1), lambda i: (0, 0), memory_space=pltpu.SMEM),
            pl.BlockSpec((tm, _LANES), lambda i: (i, 0)),
        ],
        out_specs=pl.BlockSpec((tm, _LANES), lambda i: (i, 0)),
        compiler_params=pltpu.CompilerParams(
            dimension_semantics=("parallel",),
            vmem_limit_bytes=_VMEM_LIMIT),
    )(delta2d, zp2d, x2d)

    out_flat = out2d.reshape(-1)
    if pad:
        out_flat = out_flat[:total]
    return out_flat.reshape(orig_shape)


# ---------------- pure-JAX reference (for correctness check) ----------------

def _reference(x, n_bits=8):
    n_levels = 2 ** n_bits
    xf = x.astype(jnp.float32)
    xmin = xf.min()
    xmax = xf.max()
    x_min_c = jnp.minimum(xmin, 0.0)
    delta = (xmax - xmin) / float(n_levels - 1)
    delta = jnp.maximum(delta, jnp.float32(1e-8))
    zp = jnp.round(-x_min_c / delta)
    x_int = jnp.round(xf / delta) + zp
    x_quant = jnp.clip(x_int, 0.0, float(n_levels - 1))
    return ((x_quant - zp) * delta).astype(x.dtype)


if __name__ == "__main__":
    key = jax.random.PRNGKey(0)
    # NCHW activation, as the PyTorch module would see from a conv layer.
    x = jax.random.normal(key, (2, 4, 16, 16), dtype=jnp.float32) * 2.5 + 0.3

    out = uniform_affine_quantizer_forward(x, n_bits=8)
    out = jax.block_until_ready(out)

    ref = _reference(x, n_bits=8)
    assert out.shape == x.shape and out.dtype == x.dtype
    assert jnp.allclose(out, ref, atol=1e-5, rtol=1e-5), "mismatch vs reference"

    print("KERNEL_OK")
</pallas_src>

<mosaic_0001>
module attributes {stable_mosaic.version = 11 : i64} {
  func.func @_minmax_qparams_kernel(%arg0: i32, %arg1: memref<8x512xf32, #tpu.memory_space<vmem>>, %arg2: memref<1x1xf32, #tpu.memory_space<vmem>>, %arg3: memref<1x1xf32, #tpu.memory_space<vmem>>, %arg4: memref<1x1xf32, #tpu.memory_space<vmem>>, %arg5: memref<1x1xf32, #tpu.memory_space<vmem>>) attributes {dimension_semantics = [#tpu.dimension_semantics<arbitrary>], iteration_bounds = array<i64: 1>, scalar_prefetch = 0 : i64, scratch_operands = 2 : i64, tpu.core_type = #tpu.core_type<tc>, window_params = [{transform_indices = @transform_0, window_bounds = array<i64: 8, 512>}, {pipeline_mode = #tpu.pipeline_mode<synchronous>, transform_indices = @transform_1, window_bounds = array<i64: 1, 1>}, {pipeline_mode = #tpu.pipeline_mode<synchronous>, transform_indices = @transform_2, window_bounds = array<i64: 1, 1>}]} {
    %c0 = arith.constant 0 : index
    %c0_0 = arith.constant 0 : index
    %0 = vector.load %arg1[%c0, %c0_0] : memref<8x512xf32, #tpu.memory_space<vmem>>, vector<8x512xf32>
    %c0_i32 = arith.constant 0 : i32
    %1 = arith.cmpi eq, %arg0, %c0_i32 : i32
    %2 = arith.extui %1 : i1 to i32
    %c0_i32_1 = arith.constant 0 : i32
    %3 = arith.cmpi ne, %2, %c0_i32_1 : i32
    scf.if %3 {
      %cst_13 = arith.constant 0x7F800000 : f32
      %23 = vector.broadcast %cst_13 : f32 to vector<1x1xf32>
      %c0_14 = arith.constant 0 : index
      %c0_15 = arith.constant 0 : index
      %24 = vector.load %arg4[%c0_14, %c0_15] : memref<1x1xf32, #tpu.memory_space<vmem>>, vector<1x1xf32>
      tpu.vector_store %arg4[%c0_14, %c0_15], %23 {strides = array<i32>} : memref<1x1xf32, #tpu.memory_space<vmem>>, vector<1x1xf32>,
      %cst_16 = arith.constant 0xFF800000 : f32
      %25 = vector.broadcast %cst_16 : f32 to vector<1x1xf32>
      %c0_17 = arith.constant 0 : index
      %c0_18 = arith.constant 0 : index
      %26 = vector.load %arg5[%c0_17, %c0_18] : memref<1x1xf32, #tpu.memory_space<vmem>>, vector<1x1xf32>
      tpu.vector_store %arg5[%c0_17, %c0_18], %25 {strides = array<i32>} : memref<1x1xf32, #tpu.memory_space<vmem>>, vector<1x1xf32>,
    } else {
    }
    %c0_2 = arith.constant 0 : index
    %c0_3 = arith.constant 0 : index
    %4 = vector.load %arg4[%c0_2, %c0_3] : memref<1x1xf32, #tpu.memory_space<vmem>>, vector<1x1xf32>
    %5 = vector.shape_cast %0 : vector<8x512xf32> to vector<1x8x512xf32>
    %cst = arith.constant dense<0x7F800000> : vector<1xf32>
    %6 = vector.multi_reduction <minimumf>, %5, %cst [1, 2] : vector<1x8x512xf32> to vector<1xf32>
    %7 = vector.shape_cast %6 : vector<1xf32> to vector<1x1x1xf32>
    %8 = vector.extract %7[0, 0, 0] : f32 from vector<1x1x1xf32>
    %9 = vector.broadcast %8 : f32 to vector<1x1xf32>
    %10 = arith.minimumf %4, %9 : vector<1x1xf32>
    %c0_4 = arith.constant 0 : index
    %c0_5 = arith.constant 0 : index
    %11 = vector.load %arg4[%c0_4, %c0_5] : memref<1x1xf32, #tpu.memory_space<vmem>>, vector<1x1xf32>
    tpu.vector_store %arg4[%c0_4, %c0_5], %10 {strides = array<i32>} : memref<1x1xf32, #tpu.memory_space<vmem>>, vector<1x1xf32>,
    %c0_6 = arith.constant 0 : index
    %c0_7 = arith.constant 0 : index
    %12 = vector.load %arg5[%c0_6, %c0_7] : memref<1x1xf32, #tpu.memory_space<vmem>>, vector<1x1xf32>
    %13 = vector.shape_cast %0 : vector<8x512xf32> to vector<1x8x512xf32>
    %cst_8 = arith.constant dense<0xFF800000> : vector<1xf32>
    %14 = vector.multi_reduction <maximumf>, %13, %cst_8 [1, 2] : vector<1x8x512xf32> to vector<1xf32>
    %15 = vector.shape_cast %14 : vector<1xf32> to vector<1x1x1xf32>
    %16 = vector.extract %15[0, 0, 0] : f32 from vector<1x1x1xf32>
    %17 = vector.broadcast %16 : f32 to vector<1x1xf32>
    %18 = arith.maximumf %12, %17 : vector<1x1xf32>
    %c0_9 = arith.constant 0 : index
    %c0_10 = arith.constant 0 : index
    %19 = vector.load %arg5[%c0_9, %c0_10] : memref<1x1xf32, #tpu.memory_space<vmem>>, vector<1x1xf32>
    tpu.vector_store %arg5[%c0_9, %c0_10], %18 {strides = array<i32>} : memref<1x1xf32, #tpu.memory_space<vmem>>, vector<1x1xf32>,
    %c0_i32_11 = arith.constant 0 : i32
    %20 = arith.cmpi eq, %arg0, %c0_i32_11 : i32
    %21 = arith.extui %20 : i1 to i32
    %c0_i32_12 = arith.constant 0 : i32
    %22 = arith.cmpi ne, %21, %c0_i32_12 : i32
    scf.if %22 {
      %c0_13 = arith.constant 0 : index
      %c0_14 = arith.constant 0 : index
      %23 = vector.load %arg4[%c0_13, %c0_14] : memref<1x1xf32, #tpu.memory_space<vmem>>, vector<1x1xf32>
      %c0_15 = arith.constant 0 : index
      %c0_16 = arith.constant 0 : index
      %24 = vector.load %arg5[%c0_15, %c0_16] : memref<1x1xf32, #tpu.memory_space<vmem>>, vector<1x1xf32>
      %cst_17 = arith.constant 0.000000e+00 : f32
      %25 = vector.broadcast %cst_17 : f32 to vector<1x1xf32>
      %26 = arith.minimumf %23, %25 : vector<1x1xf32>
      %27 = arith.subf %24, %23 : vector<1x1xf32>
      %cst_18 = arith.constant 2.550000e+02 : f32
      %28 = vector.broadcast %cst_18 : f32 to vector<1x1xf32>
      %29 = arith.divf %27, %28 : vector<1x1xf32>
      %cst_19 = arith.constant 9.99999993E-9 : f32
      %30 = vector.broadcast %cst_19 : f32 to vector<1x1xf32>
      %31 = arith.maximumf %29, %30 : vector<1x1xf32>
      %cst_20 = arith.constant 0.000000e+00 : f32
      %32 = vector.broadcast %cst_20 : f32 to vector<1x1xf32>
      %33 = arith.subf %32, %26 : vector<1x1xf32>
      %34 = arith.divf %33, %31 : vector<1x1xf32>
      %35 = math.roundeven %34 : vector<1x1xf32>
      %c0_21 = arith.constant 0 : index
      %c0_22 = arith.constant 0 : index
      %36 = vector.load %arg2[%c0_21, %c0_22] : memref<1x1xf32, #tpu.memory_space<vmem>>, vector<1x1xf32>
      tpu.vector_store %arg2[%c0_21, %c0_22], %31 {strides = array<i32>} : memref<1x1xf32, #tpu.memory_space<vmem>>, vector<1x1xf32>,
      %c0_23 = arith.constant 0 : index
      %c0_24 = arith.constant 0 : index
      %37 = vector.load %arg3[%c0_23, %c0_24] : memref<1x1xf32, #tpu.memory_space<vmem>>, vector<1x1xf32>
      tpu.vector_store %arg3[%c0_23, %c0_24], %35 {strides = array<i32>} : memref<1x1xf32, #tpu.memory_space<vmem>>, vector<1x1xf32>,
    } else {
    }
    return
  }
  func.func @transform_0(%arg0: i32) -> (i32, i32) {
    %c0_i32 = arith.constant 0 : i32
    %c0_i32_0 = arith.constant 0 : i32
    return %arg0, %c0_i32 : i32, i32
  }
  func.func @transform_1(%arg0: i32) -> (i32, i32) {
    %c0_i32 = arith.constant 0 : i32
    %c0_i32_0 = arith.constant 0 : i32
    %c0_i32_1 = arith.constant 0 : i32
    return %c0_i32, %c0_i32_0 : i32, i32
  }
  func.func @transform_2(%arg0: i32) -> (i32, i32) {
    %c0_i32 = arith.constant 0 : i32
    %c0_i32_0 = arith.constant 0 : i32
    %c0_i32_1 = arith.constant 0 : i32
    return %c0_i32, %c0_i32_0 : i32, i32
  }
}

</mosaic_0001>

<bundles_post_ra>
// kernel: tpu_custom_call.1
= control target key start
LH: loop header
LB: loop body
LE: loop exit
PB: predicated region body
PF: predicated region fallthrough
CT: control target
= control target key end

     0   :  { %8 = vsyncpa [#allocation5], 0  ;;  %s274_s0 = inlined_call_operand.hbm [shape: f32[8,512], index: 0, kind: input, shape index: {}]   ;;  %s275_s1 = inlined_call_operand.hbm [shape: f32[1,1], index: 1, kind: output, shape index: {0}]   ;;  %s276_s2 = inlined_call_operand.hbm [shape: f32[1,1], index: 2, kind: output, shape index: {1}]  }
   0x1   :  { %9 = vsyncpa [#allocation6], 0 }
   0x2   :  { %10 = vsyncpa [#allocation9], 0  ;;  %s16_s11 = sshll.u32 %s274_s0, 4  ;;  %s238_s12 = smov [#allocation4]   ;;  %s17_s11 = int_to_ptr.hbm [resolvable:$true] %s16_s11 }
   0x3   :  { %s18_s13 = sshll.u32 %s238_s12, 4  ;;  %s19_s13 = int_to_ptr.vmem [resolvable:$true] %s18_s13 }
   0x4   :  { %21 = dma.hbm_to_vmem [thread:$0]  %s17_s11, 512, %s19_s13, [#allocation5]  }
   0x5   :  { %232 = dma.done.wait [#allocation5], 512  }
   0x6   :  { %233 = vsyncadd [#allocation5], 4294966784  ;;  %v26_v0 = vld [vmem:[#allocation4] sm:$0xff]  ;;  %v27_v1 = vld [vmem:[#allocation4 + $0x8] sm:$0xff]  ;;  %vm34_vm0 = vcmask 0   ;;  %v239_v10 = vmov inf  }
   0x7   :  { %v28_v2 = vld [vmem:[#allocation4 + $0x10] sm:$0xff]  ;;  %v29_v3 = vld [vmem:[#allocation4 + $0x18] sm:$0xff]  ;;  %v38_v4 = vmin.f32 %v26_v0, %v27_v1  ;;  %v55_v7 = vmax.f32 %v26_v0, %v27_v1  ;;  %35 = vst.msk [vmem:[#allocation2] sm:$0x1] %vm34_vm0, %v239_v10  ;;  %v240_v25 = vmov -inf   ;;  %v241_v26 = vmov 255.0  }
   0x8   :  { %v39_v5 = vmin.f32 %v28_v2, %v29_v3  ;;  %v56_v8 = vmax.f32 %v28_v2, %v29_v3  ;;  %36 = vst.msk [vmem:[#allocation3] sm:$0x1] %vm34_vm0, %v240_v25  ;;  %156 = vrcp.f32 %v241_v26  ;;  %s242_s15 = smov [#allocation7]   ;;  %s112_s19 = sshll.u32 %s275_s1, 4  ;;  %s113_s19 = int_to_ptr.hbm [resolvable:$true] %s112_s19 }
   0x9   :  { %s110_s16 = sshll.u32 %s242_s15, 4  ;;  %s243_s1 = smov [#allocation8]   ;;  %s111_s16 = int_to_ptr.vmem [resolvable:$true] %s110_s16 }
   0xa   :  { %v40_v6 = vmin.f32 %v38_v4, %v39_v5  ;;  %v57_v9 = vmax.f32 %v55_v7, %v56_v8  ;;  %s121_s20 = sshll.u32 %s243_s1, 4  ;;  %s123_s23 = sshll.u32 %s276_s2, 4  ;;  %s122_s20 = int_to_ptr.vmem [resolvable:$true] %s121_s20  ;;  %s124_s23 = int_to_ptr.hbm [resolvable:$true] %s123_s23 }
   0xc   :  { %41 = vmin.xlane.f32.xlu0 %v40_v6 }
   0xe   :  { %v37_v27 = vld [vmem:[#allocation2] sm:$0x1]  ;;  %v157_v28 = vpop.eup %156 }
   0xf   :  { %v78_v31 = vmul.f32 255.0, %v157_v28  ;;  %v54_v32 = vld [vmem:[#allocation3] sm:$0x1]  ;;  %vm82_vm1 = vweird.f32 %v157_v28 }
  0x11   :  { %v79_v33 = vsub.f32 1.0, %v78_v31 }
  0x13   :  { %v80_v36 = vmul.f32 %v157_v28, %v79_v33 }
  0x14   :  { %58 = vmax.xlane.f32.xlu0 %v57_v9 }
  0x15   :  { %v81_v37 = vadd.f32 %v157_v28, %v80_v36 }
  0x17   :  { %v83_v40 = vsel %vm82_vm1, %v157_v28, %v81_v37 }
  0x7f   :  { %v42_v11 = vpop.xlane.xlu0 %41 }
  0x80   :  { %v43_v12 = vrot.slane %v42_v11, 4 }
  0x82   :  { %v44_v13 = vmin.f32 %v42_v11, %v43_v12 }
  0x84   :  { %v45_v14 = vrot.slane %v44_v13, 2 }
  0x86   :  { %v46_v15 = vmin.f32 %v44_v13, %v45_v14 }
  0x87   :  { %v59_v16 = vpop.xlane.xlu0 %58 }
  0x88   :  { %v60_v17 = vrot.slane %v59_v16, 4  ;;  %v47_v18 = vrot.slane %v46_v15, 1 }
  0x8a   :  { %v61_v19 = vmax.f32 %v59_v16, %v60_v17  ;;  %v48_v20 = vmin.f32 %v46_v15, %v47_v18 }
  0x8c   :  { %v62_v21 = vrot.slane %v61_v19, 2  ;;  %138 = vpush %v48_v20 }
  0x8e   :  { %v63_v22 = vmax.f32 %v61_v19, %v62_v21 }
  0x90   :  { %v64_v23 = vrot.slane %v63_v22, 1 }
  0x92   :  { %v65_v24 = vmax.f32 %v63_v22, %v64_v23 }
  0x94   :  { %140 = vpush %v65_v24 }
  0xbd   :  { %s139_s0 = spop %138 }
  0xbe   :  { %v50_v29 = vstv %s139_s0 }
  0xbf   :  { %v51_v30 = vmin.f32 %v37_v27, %v50_v29 }
  0xc1   :  { %53 = vst.msk [vmem:[#allocation2] sm:$0x1] %vm34_vm0, %v51_v30 }
  0xc5   :  { %s141_s14 = spop %140 }
  0xc6   :  { %v67_v34 = vstv %s141_s14 }
  0xc7   :  { %v68_v35 = vmax.f32 %v54_v32, %v67_v34 }
  0xc8   :  { %v73_v38 = vld [vmem:[#allocation2] sm:$0x1] }
  0xc9   :  { %69 = vst.msk [vmem:[#allocation3] sm:$0x1] %vm34_vm0, %v68_v35  ;;  %v75_v48 = vmin.f32 %v73_v38, 0.0 }
  0xcb   :  { %v86_v53 = vsub.f32 0.0, %v75_v48 }
  0xd0   :  { %v74_v39 = vld [vmem:[#allocation3] sm:$0x1] }
  0xd1   :  { %v76_v41 = vsub.f32 %v74_v39, %v73_v38 }
  0xd3   :  { %v84_v42 = vmul.f32 %v83_v40, %v76_v41 }
  0xd5   :  { %v85_v43 = vmax.f32 %v84_v42, 1e-08 }
  0xd7   :  { %158 = vrcp.f32 %v85_v43  ;;  %103 = vst.msk [vmem:[#allocation7] sm:$0x1] %vm34_vm0, %v85_v43  ;;  %v98_v47 = vand.u32 2147483648, %v85_v43  ;;  %v96_v50 = vand.u32 2147483647, %v85_v43  ;;  %vm92_vm3 = vweird.f32 %v85_v43 }
  0xd8   :  { %115 = dma.vmem_to_hbm [thread:$0]  %s111_s16, 16, %s113_s19, [#allocation6]  }
  0xd9   :  { %v99_v52 = vor.u32 1.1754944e-38, %v98_v47  ;;  %vm97_vm5 = vcmp.eq.f32.partialorder %v96_v50, 8.507059e+37 }
  0xdd   :  { %v159_v44 = vpop.eup %158 }
  0xde   :  { %v88_v45 = vmul.f32 %v159_v44, %v85_v43  ;;  %vm93_vm2 = vweird.f32 %v159_v44 }
  0xdf   :  { %vm94_vm4 = vmor %vm92_vm3, %vm93_vm2 }
  0xe0   :  { %v89_v46 = vsub.f32 1.0, %v88_v45 }
  0xe2   :  { %v90_v49 = vmul.f32 %v159_v44, %v89_v46 }
  0xe4   :  { %v91_v51 = vadd.f32 %v159_v44, %v90_v49 }
  0xe6   :  { %v95_v54 = vsel %vm94_vm4, %v159_v44, %v91_v51 }
  0xe7   :  { %v100_v55 = vsel %vm97_vm5, %v99_v52, %v95_v54 }
  0xe8   :  { %v101_v56 = vmul.f32 %v100_v55, %v86_v53 }
  0xea   :  { %v144_v57 = vcvt.f32.s32 %v101_v56  ;;  %v142_v59 = vand.u32 2147483647, %v101_v56  ;;  %v147_v61 = vand.u32 2147483648, %v101_v56 }
  0xec   :  { %v145_v58 = vcvt.s32.f32 %v144_v57  ;;  %vm143_vm6 = vcmp.lt.f32.partialorder %v142_v59, 8388608.0 }
  0xee   :  { %v146_v60 = vand.u32 2147483647, %v145_v58 }
  0xf0   :  { %v148_v62 = vor.u32 %v147_v61, %v146_v60 }
  0xf2   :  { %v149_v63 = vsel %vm143_vm6, %v148_v62, %v101_v56 }
  0xf3   :  { %104 = vst.msk [vmem:[#allocation8] sm:$0x1] %vm34_vm0, %v149_v63 }
  0xf4   :  { %126 = dma.vmem_to_hbm [thread:$0]  %s122_s20, 16, %s124_s23, [#allocation9]  }
  0xf5   :  { %234 = dma.done.wait [#allocation6], 16  }
  0xf6   :  { %235 = vsyncadd [#allocation6], 4294967280 }
  0xf7   :  { %236 = dma.done.wait [#allocation9], 16  }
  0xf8   :  { %237 = vsyncadd [#allocation9], 4294967280 }
  0xf9   :  { %135 = vsyncpa [#allocation5], 1 }
  0xfa   :  { %136 = vsyncpa [#allocation6], 1 }
  0xfb   :  { %137 = vsyncpa [#allocation9], 1 }

</bundles_post_ra>
